<compile_context>
chip_gen: v5e
topology: v5e:2x2
jax: 0.10.0
libtpu: 0.0.40
codegen_flags: <defaults>
</compile_context>

<pallas_src>
import functools
import math

import jax
import jax.numpy as jnp
from jax.experimental import pallas as pl
from jax.experimental.pallas import tpu as pltpu


def _prenorm_kernel(x_ref, shift_ref, scale_ref, o_ref):
    # shift/scale are (1, col_block) f32 rows; the row broadcast happens on
    # the VPU (free in a mem-bound kernel).  bf16 x promotes to f32 math.
    y = (x_ref[...] + shift_ref[...]) * scale_ref[...]
    o_ref[...] = y.astype(o_ref.dtype)


def _round_up(n, m):
    return ((n + m - 1) // m) * m


def _cdiv(a, b):
    return (a + b - 1) // b


def _sublane_granule(dtype):
    # Packed sublane count: f32 -> 8, bf16 -> 16, int8/fp8 -> 32.
    return {1: 32, 2: 16, 4: 8}.get(jnp.dtype(dtype).itemsize, 8)


@functools.lru_cache(maxsize=1)
def _tpu_cores_and_vmem():
    """Best-effort query of (#TensorCores per chip, VMEM bytes per core)."""
    cores = 1
    vmem_cap = 64 << 20  # conservative default (v7x per-TC VMEM)
    try:
        info = pltpu.get_tpu_info()
        vmem_cap = int(getattr(info, "vmem_capacity_bytes", vmem_cap))
        for name in ("num_tensorcores", "tensorcore_count", "num_cores",
                     "cores_per_chip"):
            v = getattr(info, name, None)
            if v:
                cores = int(v)
                break
    except Exception:
        pass
    if cores == 1:
        try:
            v = getattr(jax.devices()[0], "num_cores", None)
            if v:
                cores = int(v)
        except Exception:
            pass
    return cores, vmem_cap


def _pallas_prenorm_2d(x2d, shift_row, scale_row):
    rows, width = x2d.shape
    itemsize = jnp.dtype(x2d.dtype).itemsize
    granule = _sublane_granule(x2d.dtype)
    cores, vmem_cap = _tpu_cores_and_vmem()

    target = 4 << 20  # ~4 MiB per block -> ~16 MiB resident (in+out, 2-buf)

    # Column tiling only when a single granule-row stripe would already
    # exceed the block budget (very wide merged width).
    bytes_per_row = width * itemsize
    if bytes_per_row * granule > target:
        col_block = max(128, (target // (granule * itemsize)) // 128 * 128)
        col_block = min(col_block, width)
    else:
        col_block = width

    row_block = max(granule,
                    (target // max(1, col_block * itemsize)) // granule * granule)
    row_block = min(row_block, _round_up(rows, granule))

    # Megacore: with parallel grid axes the tiles shard across TensorCores;
    # make sure each core gets >= 2 tiles when the array is big enough.
    row_tiles = _cdiv(rows, row_block)
    col_tiles = _cdiv(width, col_block)
    if cores > 1 and row_tiles * col_tiles < 2 * cores and rows >= 2 * cores * granule:
        want_row_tiles = _cdiv(2 * cores, col_tiles)
        row_block = max(granule, _round_up(_cdiv(rows, want_row_tiles), granule))
        row_tiles = _cdiv(rows, row_block)

    grid = (row_tiles, col_tiles)

    # Explicit scoped-VMEM limit: resident = in+out double-buffered blocks
    # plus the (sublane-padded, double-buffered) param rows, with headroom.
    block_bytes = row_block * col_block * itemsize
    params_bytes = 2 * 2 * 8 * col_block * 4
    resident = 4 * block_bytes + params_bytes
    vmem_limit = int(min(vmem_cap * 3 // 4, max(32 << 20, resident + (8 << 20))))
    vmem_limit = max(vmem_limit, resident + (2 << 20))

    cost = pl.CostEstimate(
        flops=2 * rows * width,
        transcendentals=0,
        bytes_accessed=2 * rows * width * itemsize + 2 * width * 4,
    )

    return pl.pallas_call(
        _prenorm_kernel,
        out_shape=jax.ShapeDtypeStruct((rows, width), x2d.dtype),
        grid_spec=pltpu.PrefetchScalarGridSpec(
            num_scalar_prefetch=0,
            grid=grid,
            in_specs=[
                pl.BlockSpec((row_block, col_block), lambda i, j: (i, j)),
                pl.BlockSpec((1, col_block), lambda i, j: (0, j)),
                pl.BlockSpec((1, col_block), lambda i, j: (0, j)),
            ],
            out_specs=pl.BlockSpec((row_block, col_block), lambda i, j: (i, j)),
        ),
        compiler_params=pltpu.CompilerParams(
            dimension_semantics=("parallel", "parallel"),
            vmem_limit_bytes=vmem_limit,
        ),
        cost_estimate=cost,
    )(x2d, shift_row, scale_row)


def prenorm_forward(x, shift, scale):
    """Apply PreNormLayer forward: (x + shift) * scale along the last dim."""
    orig_shape = x.shape
    n_units = int(shift.shape[0])
    # Same contract as the PyTorch module's broadcast / update_stats assert.
    assert n_units == 1 or orig_shape[-1] == n_units, (
        f"Expected last dimension of size {n_units}, got {orig_shape[-1]}.")

    shift = shift.astype(jnp.float32).reshape(-1)
    scale = scale.astype(jnp.float32).reshape(-1)

    # Minimal merge factor making the lane dim a multiple of 128 (unmasked
    # vector stores); block size then comes from the row/col tiles.
    k = 128 // math.gcd(n_units, 128)
    width = k * n_units

    x_flat = x.reshape(-1, n_units)
    rows_u = x_flat.shape[0]
    main_rows_u = (rows_u // k) * k

    pieces = []
    if main_rows_u > 0:
        x_main = x_flat[:main_rows_u].reshape(-1, width)
        shift_row = jnp.tile(shift, k).reshape(1, width)
        scale_row = jnp.tile(scale, k).reshape(1, width)
        out_main = _pallas_prenorm_2d(x_main, shift_row, scale_row)
        pieces.append(out_main.reshape(main_rows_u, n_units))
    if main_rows_u < rows_u:
        # < k leftover rows: tiny, handled with plain jnp so the bulk of the
        # data keeps the lane-dense (unmasked-store) path.
        tail = x_flat[main_rows_u:]
        pieces.append(((tail + shift) * scale).astype(x.dtype))

    out = pieces[0] if len(pieces) == 1 else jnp.concatenate(pieces, axis=0)
    return out.reshape(orig_shape)


class PreNormLayerJAX:
    """JAX/Pallas port of the PyTorch PreNormLayer (inference forward only)."""

    def __init__(self, n_units, shift=True, scale=True):
        assert shift or scale
        self.n_units = n_units
        # Deterministic init, exactly as the PyTorch module's __init__.
        self.shift = jnp.zeros((n_units,), jnp.float32) if shift else None
        self.scale = jnp.ones((n_units,), jnp.float32) if scale else None
        # TODO(synk): start_updates / update_stats / stop_updates are host-side
        # pre-training statistics bookkeeping, not part of the hot forward path.

    def __call__(self, x):
        shift = (self.shift if self.shift is not None
                 else jnp.zeros((self.n_units,), jnp.float32))
        scale = (self.scale if self.scale is not None
                 else jnp.ones((self.n_units,), jnp.float32))
        return prenorm_forward(x, shift, scale)


if __name__ == "__main__":
    key = jax.random.PRNGKey(0)
    k1, k2, k3, k4, k5 = jax.random.split(key, 5)

    batch, seq, n_units = 2, 8, 32
    x = jax.random.normal(k1, (batch, seq, n_units), jnp.float32)

    # 1) Default-initialized module (shift=0, scale=1) -> identity forward.
    layer = PreNormLayerJAX(n_units)
    out_default = jax.block_until_ready(layer(x))
    assert jnp.allclose(out_default, x, atol=1e-6)

    # 2) Non-trivial shift/scale (as if set by stop_updates), lane-dense path.
    layer.shift = jax.random.normal(k2, (n_units,), jnp.float32)
    layer.scale = jax.random.uniform(k3, (n_units,), jnp.float32,
                                     minval=0.5, maxval=2.0)
    out = jax.block_until_ready(layer(x))
    ref = (x + layer.shift) * layer.scale
    assert jnp.allclose(out, ref, atol=1e-5)

    # 3) Row count not divisible by the merge factor -> lane-dense prefix via
    #    the kernel, < k remainder rows via jnp.
    x_odd = jax.random.normal(k4, (3, 5, n_units), jnp.float32)
    out_odd = jax.block_until_ready(layer(x_odd))
    ref_odd = (x_odd + layer.shift) * layer.scale
    assert jnp.allclose(out_odd, ref_odd, atol=1e-5)

    # 4) shift-only module (scale buffer is None).
    layer_shift_only = PreNormLayerJAX(n_units, shift=True, scale=False)
    layer_shift_only.shift = layer.shift
    out_s = jax.block_until_ready(layer_shift_only(x))
    assert jnp.allclose(out_s, x + layer.shift, atol=1e-5)

    # 5) bf16 input: dtype-aware sublane granule, f32 math, bf16 output.
    x_bf16 = jax.random.normal(k5, (2, 16, n_units), jnp.float32)
    out_bf16 = jax.block_until_ready(layer(x_bf16.astype(jnp.bfloat16)))
    ref_bf16 = ((x_bf16.astype(jnp.bfloat16).astype(jnp.float32) + layer.shift)
                * layer.scale)
    assert out_bf16.dtype == jnp.bfloat16
    assert jnp.allclose(out_bf16.astype(jnp.float32), ref_bf16, atol=3e-2)

    print("KERNEL_OK")
</pallas_src>

<mosaic_0001>
module attributes {stable_mosaic.version = 11 : i64} {
  func.func @_prenorm_kernel(%arg0: i32, %arg1: i32, %arg2: memref<8x128xf32, #tpu.memory_space<vmem>>, %arg3: memref<1x128xf32, #tpu.memory_space<vmem>>, %arg4: memref<1x128xf32, #tpu.memory_space<vmem>>, %arg5: memref<8x128xf32, #tpu.memory_space<vmem>>) attributes {dimension_semantics = [#tpu.dimension_semantics<parallel>, #tpu.dimension_semantics<parallel>], iteration_bounds = array<i64: 1, 1>, scalar_prefetch = 0 : i64, scratch_operands = 0 : i64, tpu.core_type = #tpu.core_type<tc>, window_params = [{transform_indices = @transform_0, window_bounds = array<i64: 8, 128>}, {transform_indices = @transform_1, window_bounds = array<i64: 1, 128>}, {transform_indices = @transform_2, window_bounds = array<i64: 1, 128>}, {transform_indices = @transform_3, window_bounds = array<i64: 8, 128>}]} {
    %c0 = arith.constant 0 : index
    %c0_0 = arith.constant 0 : index
    %0 = vector.load %arg2[%c0, %c0_0] : memref<8x128xf32, #tpu.memory_space<vmem>>, vector<8x128xf32>
    %c0_1 = arith.constant 0 : index
    %c0_2 = arith.constant 0 : index
    %1 = vector.load %arg3[%c0_1, %c0_2] : memref<1x128xf32, #tpu.memory_space<vmem>>, vector<1x128xf32>
    %2 = vector.broadcast %1 : vector<1x128xf32> to vector<8x128xf32>
    %3 = arith.addf %0, %2 : vector<8x128xf32>
    %c0_3 = arith.constant 0 : index
    %c0_4 = arith.constant 0 : index
    %4 = vector.load %arg4[%c0_3, %c0_4] : memref<1x128xf32, #tpu.memory_space<vmem>>, vector<1x128xf32>
    %5 = vector.broadcast %4 : vector<1x128xf32> to vector<8x128xf32>
    %6 = arith.mulf %3, %5 : vector<8x128xf32>
    %c0_5 = arith.constant 0 : index
    %c0_6 = arith.constant 0 : index
    %7 = vector.load %arg5[%c0_5, %c0_6] : memref<8x128xf32, #tpu.memory_space<vmem>>, vector<8x128xf32>
    tpu.vector_store %arg5[%c0_5, %c0_6], %6 {strides = array<i32>} : memref<8x128xf32, #tpu.memory_space<vmem>>, vector<8x128xf32>,
    return
  }
  func.func @transform_0(%arg0: i32, %arg1: i32) -> (i32, i32) {
    %c0_i32 = arith.constant 0 : i32
    return %arg0, %arg1 : i32, i32
  }
  func.func @transform_1(%arg0: i32, %arg1: i32) -> (i32, i32) {
    %c0_i32 = arith.constant 0 : i32
    %c0_i32_0 = arith.constant 0 : i32
    return %c0_i32, %arg1 : i32, i32
  }
  func.func @transform_2(%arg0: i32, %arg1: i32) -> (i32, i32) {
    %c0_i32 = arith.constant 0 : i32
    %c0_i32_0 = arith.constant 0 : i32
    return %c0_i32, %arg1 : i32, i32
  }
  func.func @transform_3(%arg0: i32, %arg1: i32) -> (i32, i32) {
    %c0_i32 = arith.constant 0 : i32
    return %arg0, %arg1 : i32, i32
  }
}

</mosaic_0001>

<bundles_post_ra>
// kernel: tpu_custom_call.1
= control target key start
LH: loop header
LB: loop body
LE: loop exit
PB: predicated region body
PF: predicated region fallthrough
CT: control target
= control target key end

     0   :  { %8 = vsyncpa [#allocation3], 0  ;;  %s199_s0 = inlined_call_operand.hbm [shape: f32[4,128], index: 0, kind: input, shape index: {}]   ;;  %s200_s1 = inlined_call_operand.hbm [shape: f32[1,128], index: 1, kind: input, shape index: {}]   ;;  %s201_s2 = inlined_call_operand.vmem [shape: f32[1,128], index: 2, kind: input, shape index: {}]   ;;  %s202_s3 = inlined_call_operand.hbm [shape: f32[4,128], index: 3, kind: output, shape index: {}]  }
   0x1   :  { %9 = vsyncpa [#allocation6], 0 }
   0x2   :  { %10 = vsyncpa [#allocation4], 0 }
   0x3   :  { %14 = vsyncadd [#allocation3], 64  ;;  %s15_s14 = sshll.u32 %s199_s0, 4  ;;  %s162_s15 = smov [#allocation2]   ;;  %s16_s14 = int_to_ptr.hbm [resolvable:$true] %s15_s14 }
   0x4   :  { %s17_s16 = sshll.u32 %s162_s15, 4  ;;  %s29_s19 = sshll.u32 %s200_s1, 4  ;;  %s18_s16 = int_to_ptr.vmem [resolvable:$true] %s17_s16  ;;  %s30_s19 = int_to_ptr.hbm [resolvable:$true] %s29_s19 }
   0x5   :  { %s163_s20 = smov 64   ;;  %s164_s21 = smov 4  }
   0x6   :  { %23 = dma.hbm_to_vmem [thread:$0]  %s16_s14, 64, %s18_s16, [#allocation3], %s163_s20, %s163_s20, %s164_s21  }
   0x7   :  { %s165_s22 = smov [#allocation5]  }
   0x8   :  { %s31_s23 = sshll.u32 %s165_s22, 4  ;;  %s32_s23 = int_to_ptr.vmem [resolvable:$true] %s31_s23 }
   0x9   :  { %34 = dma.hbm_to_vmem [thread:$0]  %s30_s19, 16, %s32_s23, [#allocation6]  }
   0xa   :  { %156 = dma.done.wait [#allocation3], 128  }
   0xb   :  { %157 = vsyncadd [#allocation3], 4294967168 }
   0xc   :  { %158 = dma.done.wait [#allocation6], 16  }
   0xd   :  { %159 = vsyncadd [#allocation6], 4294967280  ;;  %v45_v0 = vld [vmem:[#allocation2] sm:$0xff]  ;;  %v82_v1 = vld [vmem:[#allocation5] ss:$0 sm:$0xff] }
   0xe   :  { %v83_v2 = vld [vmem:[%s201_s2] ss:$0 sm:$0xff]  ;;  %v50_v3 = vadd.f32 %v82_v1, %v45_v0 }
  0x10   :  { %v55_v4 = vmul.f32 %v83_v2, %v50_v3 }
  0x12   :  { %56 = vst [vmem:[#allocation7] sm:$0xff] %v55_v4 }
  0x13   :  { %60 = vsyncadd [#allocation4], 64  ;;  %s63_s26 = sshll.u32 %s202_s3, 4  ;;  %s166_s27 = smov [#allocation7]   ;;  %s64_s26 = int_to_ptr.hbm [resolvable:$true] %s63_s26 }
  0x14   :  { %s61_s28 = sshll.u32 %s166_s27, 4  ;;  %s62_s28 = int_to_ptr.vmem [resolvable:$true] %s61_s28 }
  0x15   :  { %69 = dma.vmem_to_hbm [thread:$0]  %s62_s28, 64, %s64_s26, [#allocation4], %s163_s20, %s163_s20, %s164_s21  }
  0x16   :  { %160 = dma.done.wait [#allocation4], 128  }
  0x17   :  { %161 = vsyncadd [#allocation4], 4294967168 }
  0x18   :  { %74 = vsyncpa [#allocation3], 1 }
  0x19   :  { %75 = vsyncpa [#allocation6], 1 }
  0x1a   :  { %76 = vsyncpa [#allocation4], 1 }

</bundles_post_ra>
